<compile_context>
chip_gen: v5e
topology: v5e:2x2
jax: 0.10.0
libtpu: 0.0.40
codegen_flags: <defaults>
</compile_context>

<pallas_src>
import functools

import jax
import jax.numpy as jnp
from jax import lax
from jax.experimental import pallas as pl
from jax.experimental.pallas import tpu as pltpu


def _sam_kernel(x_ref, ximg_ref, w12_ref, w3_ref,
                x1_ref, img_ref,
                xpad_scr, imgpad_scr, p12_scr, p3_scr,
                *, H, W, K, C, PAD):
    """Fused SAM forward for one batch element (channels-first, flat spatial).

    x_ref      : (1, C, HW)        input features, lane axis = H*W
    ximg_ref   : (1, 3, HW)        input image
    w12_ref    : (C+3, K*K*C)      fused conv1|conv2 weights, (cout, kh, kw, cin)
    w3_ref     : (C, K*K*3)        conv3 weights, (cout, kh, kw, cin)
    x1_ref     : (1, C, HW)        output features
    img_ref    : (1, 3, HW)        output image
    xpad_scr   : VMEM (C, HW+2*PAD)  flat-padded features
    imgpad_scr : VMEM (3, HW+2*PAD)  flat-padded image
    p12_scr    : VMEM (K*K*C, HW)  stacked shifted planes (transposed im2col)
    p3_scr     : VMEM (K*K*3, HW)
    """
    P = K // 2
    HW = H * W
    f32 = jnp.float32

    # Column index of every flat spatial position; masks kill the horizontal
    # wrap-around of flat-shifted windows (vertical OOB lands in the zero halo).
    col = lax.broadcasted_iota(jnp.int32, (1, HW), 1) % W
    col_masks = {dw: (col + dw >= 0) & (col + dw < W)
                 for dw in range(-P, P + 1) if dw != 0}

    def load_flat_padded(src, pad_ref, cin):
        # Re-zero only the tiny halo each step (correct under "parallel" grid
        # sharding); the interior is fully overwritten.
        if PAD > 0:
            zeros = jnp.zeros((cin, PAD), f32)
            pad_ref[:, 0:PAD] = zeros
            pad_ref[:, PAD + HW:PAD + HW + PAD] = zeros
        pad_ref[:, PAD:PAD + HW] = src.astype(f32)

    def build_patches(pad_ref, patches_ref, cin):
        # Stack the K*K flat-shifted planes into (K*K*cin, HW).
        for kh in range(K):
            for kw in range(K):
                dh, dw = kh - P, kw - P
                start = PAD + dh * W + dw            # static, >= 0
                win = pad_ref[:, start:start + HW]   # (cin, HW)
                if dw != 0:
                    win = jnp.where(col_masks[dw], win, 0.0)
                tap = kh * K + kw
                patches_ref[tap * cin:(tap + 1) * cin, :] = win

    x_flat = x_ref[0].astype(f32)                    # (C, HW), residual source

    # conv1 + conv2 fused: one (C+3, K*K*C) x (K*K*C, HW) MXU matmul.
    load_flat_padded(x_flat, xpad_scr, C)
    build_patches(xpad_scr, p12_scr, C)
    y12 = jnp.dot(w12_ref[...].astype(f32), p12_scr[...],
                  preferred_element_type=f32)        # (C+3, HW)
    y1 = y12[:C, :]                                  # conv1(x)
    img = y12[C:, :] + ximg_ref[0].astype(f32)       # conv2(x) + x_img
    img_ref[0] = img.astype(img_ref.dtype)

    # conv3(img) -> sigmoid gate -> residual.
    load_flat_padded(img, imgpad_scr, 3)
    build_patches(imgpad_scr, p3_scr, 3)
    y3 = jnp.dot(w3_ref[...].astype(f32), p3_scr[...],
                 preferred_element_type=f32)         # (C, HW)
    x1 = y1 * jax.nn.sigmoid(y3) + x_flat
    x1_ref[0] = x1.astype(x1_ref.dtype)


def sam_forward(x, x_img, w1, w2, w3):
    """SAM forward. x: (B, C, H, W) NCHW, x_img: (B, 3, H, W). Returns (x1, img) NCHW."""
    B, C, H, W = x.shape
    K = w1.shape[0]
    P = K // 2
    HW = H * W
    PAD = P * (W + 1)
    C3 = C + 3

    # Fuse conv1/conv2 along output channels and reorder the weights so the
    # reduction axis matches the kernel's (kh, kw, cin) im2col row order.
    w12 = jnp.concatenate([w1, w2], axis=-1)                          # (K,K,C,C+3)
    w12_t = jnp.transpose(w12, (3, 0, 1, 2)).reshape(C3, K * K * C)   # (C+3, K*K*C)
    w3_t = jnp.transpose(w3, (3, 0, 1, 2)).reshape(C, K * K * 3)      # (C,  K*K*3)

    # Channels-first flat-spatial layout: free reshape of contiguous NCHW.
    x_flat = x.reshape(B, C, HW)
    ximg_flat = x_img.reshape(B, 3, HW)

    kernel = functools.partial(_sam_kernel, H=H, W=W, K=K, C=C, PAD=PAD)

    x1_flat, img_flat = pl.pallas_call(
        kernel,
        out_shape=(jax.ShapeDtypeStruct((B, C, HW), x.dtype),
                   jax.ShapeDtypeStruct((B, 3, HW), x.dtype)),
        grid_spec=pltpu.PrefetchScalarGridSpec(
            num_scalar_prefetch=0,
            grid=(B,),
            in_specs=[
                pl.BlockSpec((1, C, HW), lambda b: (b, 0, 0)),
                pl.BlockSpec((1, 3, HW), lambda b: (b, 0, 0)),
                pl.BlockSpec((C3, K * K * C), lambda b: (0, 0)),
                pl.BlockSpec((C, K * K * 3), lambda b: (0, 0)),
            ],
            out_specs=[
                pl.BlockSpec((1, C, HW), lambda b: (b, 0, 0)),
                pl.BlockSpec((1, 3, HW), lambda b: (b, 0, 0)),
            ],
            scratch_shapes=[
                pltpu.VMEM((C, HW + 2 * PAD), jnp.float32),
                pltpu.VMEM((3, HW + 2 * PAD), jnp.float32),
                pltpu.VMEM((K * K * C, HW), jnp.float32),
                pltpu.VMEM((K * K * 3, HW), jnp.float32),
            ],
        ),
        compiler_params=pltpu.CompilerParams(
            dimension_semantics=("parallel",),
            vmem_limit_bytes=64 * 1024 * 1024,
        ),
    )(x_flat, ximg_flat, w12_t, w3_t)

    # Free reshapes back to NCHW (no transposes needed).
    return x1_flat.reshape(B, C, H, W), img_flat.reshape(B, 3, H, W)


def sam_reference(x, x_img, w1, w2, w3):
    """Pure-JAX reference matching the PyTorch forward semantics."""
    def conv(inp_nhwc, w):
        return lax.conv_general_dilated(
            inp_nhwc, w, window_strides=(1, 1), padding='SAME',
            dimension_numbers=('NHWC', 'HWIO', 'NHWC'))

    x_nhwc = jnp.transpose(x, (0, 2, 3, 1))
    ximg = jnp.transpose(x_img, (0, 2, 3, 1))
    x1 = conv(x_nhwc, w1)
    img = conv(x_nhwc, w2) + ximg
    x2 = jax.nn.sigmoid(conv(img, w3))
    x1 = x1 * x2 + x_nhwc
    return (jnp.transpose(x1, (0, 3, 1, 2)),
            jnp.transpose(img, (0, 3, 1, 2)))


if __name__ == "__main__":
    B, n_feat, H, W, K = 2, 4, 16, 16, 3

    key = jax.random.PRNGKey(0)
    k1, k2, k3, k4, k5 = jax.random.split(key, 5)

    # Deterministic synthetic inputs / parameters (HWIO weight layout).
    x = jax.random.normal(k1, (B, n_feat, H, W), jnp.float32)
    x_img = jax.random.normal(k2, (B, 3, H, W), jnp.float32)
    w1 = 0.1 * jax.random.normal(k3, (K, K, n_feat, n_feat), jnp.float32)
    w2 = 0.1 * jax.random.normal(k4, (K, K, n_feat, 3), jnp.float32)
    w3 = 0.1 * jax.random.normal(k5, (K, K, 3, n_feat), jnp.float32)

    x1, img = jax.block_until_ready(sam_forward(x, x_img, w1, w2, w3))

    x1_ref, img_ref = sam_reference(x, x_img, w1, w2, w3)
    assert x1.shape == (B, n_feat, H, W) and img.shape == (B, 3, H, W)
    assert jnp.allclose(x1, x1_ref, atol=2e-4, rtol=2e-4)
    assert jnp.allclose(img, img_ref, atol=2e-4, rtol=2e-4)

    print("KERNEL_OK")
</pallas_src>

<mosaic_0001>
module attributes {stable_mosaic.version = 11 : i64} {
  func.func @_sam_kernel(%arg0: i32, %arg1: memref<1x4x256xf32, #tpu.memory_space<vmem>>, %arg2: memref<1x3x256xf32, #tpu.memory_space<vmem>>, %arg3: memref<7x36xf32, #tpu.memory_space<vmem>>, %arg4: memref<4x27xf32, #tpu.memory_space<vmem>>, %arg5: memref<1x4x256xf32, #tpu.memory_space<vmem>>, %arg6: memref<1x3x256xf32, #tpu.memory_space<vmem>>, %arg7: memref<4x290xf32, #tpu.memory_space<vmem>>, %arg8: memref<3x290xf32, #tpu.memory_space<vmem>>, %arg9: memref<36x256xf32, #tpu.memory_space<vmem>>, %arg10: memref<27x256xf32, #tpu.memory_space<vmem>>) attributes {dimension_semantics = [#tpu.dimension_semantics<parallel>], iteration_bounds = array<i64: 2>, scalar_prefetch = 0 : i64, scratch_operands = 4 : i64, tpu.core_type = #tpu.core_type<tc>, window_params = [{transform_indices = @transform_0, window_bounds = array<i64: 1, 4, 256>}, {transform_indices = @transform_1, window_bounds = array<i64: 1, 3, 256>}, {pipeline_mode = #tpu.pipeline_mode<synchronous>, transform_indices = @transform_2, window_bounds = array<i64: 7, 36>}, {pipeline_mode = #tpu.pipeline_mode<synchronous>, transform_indices = @transform_3, window_bounds = array<i64: 4, 27>}, {transform_indices = @transform_4, window_bounds = array<i64: 1, 4, 256>}, {transform_indices = @transform_5, window_bounds = array<i64: 1, 3, 256>}]} {
    %0 = tpu.iota {dimensions = array<i32: 1>} : vector<1x256xi32>
    %c16_i32 = arith.constant 16 : i32
    %c0_i32 = arith.constant 0 : i32
    %1 = arith.cmpi eq, %c16_i32, %c0_i32 : i32
    %c1_i32 = arith.constant 1 : i32
    %2 = arith.select %1, %c1_i32, %c16_i32 : i32
    %3 = vector.broadcast %2 : i32 to vector<1x256xi32>
    %4 = arith.remsi %0, %3 : vector<1x256xi32>
    %c0_i32_0 = arith.constant 0 : i32
    %5 = vector.broadcast %c0_i32_0 : i32 to vector<1x256xi32>
    %6 = arith.cmpi ne, %4, %5 : vector<1x256xi32>
    %c0_i32_1 = arith.constant 0 : i32
    %7 = vector.broadcast %c0_i32_1 : i32 to vector<1x256xi32>
    %8 = arith.cmpi slt, %4, %7 : vector<1x256xi32>
    %c0_i32_2 = arith.constant 0 : i32
    %9 = arith.cmpi slt, %2, %c0_i32_2 : i32
    %10 = vector.broadcast %9 : i1 to vector<1x256xi1>
    %11 = vector.broadcast %10 : vector<1x256xi1> to vector<1x256xi1>
    %12 = arith.xori %8, %11 : vector<1x256xi1>
    %13 = arith.andi %12, %6 : vector<1x256xi1>
    %14 = vector.broadcast %2 : i32 to vector<1x256xi32>
    %15 = arith.addi %4, %14 : vector<1x256xi32>
    %16 = arith.select %13, %15, %4 : vector<1x256xi1>, vector<1x256xi32>
    %c-1_i32 = arith.constant -1 : i32
    %17 = vector.broadcast %c-1_i32 : i32 to vector<1x256xi32>
    %18 = arith.addi %16, %17 : vector<1x256xi32>
    %c0_i32_3 = arith.constant 0 : i32
    %19 = vector.broadcast %c0_i32_3 : i32 to vector<1x256xi32>
    %20 = arith.cmpi sge, %18, %19 : vector<1x256xi32>
    %c-1_i32_4 = arith.constant -1 : i32
    %21 = vector.broadcast %c-1_i32_4 : i32 to vector<1x256xi32>
    %22 = arith.addi %16, %21 : vector<1x256xi32>
    %c16_i32_5 = arith.constant 16 : i32
    %23 = vector.broadcast %c16_i32_5 : i32 to vector<1x256xi32>
    %24 = arith.cmpi slt, %22, %23 : vector<1x256xi32>
    %25 = arith.andi %20, %24 : vector<1x256xi1>
    %c1_i32_6 = arith.constant 1 : i32
    %26 = vector.broadcast %c1_i32_6 : i32 to vector<1x256xi32>
    %27 = arith.addi %16, %26 : vector<1x256xi32>
    %c0_i32_7 = arith.constant 0 : i32
    %28 = vector.broadcast %c0_i32_7 : i32 to vector<1x256xi32>
    %29 = arith.cmpi sge, %27, %28 : vector<1x256xi32>
    %c1_i32_8 = arith.constant 1 : i32
    %30 = vector.broadcast %c1_i32_8 : i32 to vector<1x256xi32>
    %31 = arith.addi %16, %30 : vector<1x256xi32>
    %c16_i32_9 = arith.constant 16 : i32
    %32 = vector.broadcast %c16_i32_9 : i32 to vector<1x256xi32>
    %33 = arith.cmpi slt, %31, %32 : vector<1x256xi32>
    %34 = arith.andi %29, %33 : vector<1x256xi1>
    %c0 = arith.constant 0 : index
    %c0_10 = arith.constant 0 : index
    %c0_11 = arith.constant 0 : index
    %35 = vector.load %arg1[%c0, %c0_10, %c0_11] : memref<1x4x256xf32, #tpu.memory_space<vmem>>, vector<1x4x256xf32>
    %36 = vector.shape_cast %35 : vector<1x4x256xf32> to vector<4x256xf32>
    %cst = arith.constant 0.000000e+00 : f32
    %37 = vector.broadcast %cst : f32 to vector<4x17xf32>
    %c0_12 = arith.constant 0 : index
    %c0_13 = arith.constant 0 : index
    %38 = vector.load %arg7[%c0_12, %c0_13] : memref<4x290xf32, #tpu.memory_space<vmem>>, vector<4x17xf32>
    tpu.vector_store %arg7[%c0_12, %c0_13], %37 {strides = array<i32>} : memref<4x290xf32, #tpu.memory_space<vmem>>, vector<4x17xf32>,
    %c0_14 = arith.constant 0 : index
    %c273 = arith.constant 273 : index
    %39 = vector.load %arg7[%c0_14, %c273] : memref<4x290xf32, #tpu.memory_space<vmem>>, vector<4x17xf32>
    tpu.vector_store %arg7[%c0_14, %c273], %37 {strides = array<i32>} : memref<4x290xf32, #tpu.memory_space<vmem>>, vector<4x17xf32>,
    %c0_15 = arith.constant 0 : index
    %c17 = arith.constant 17 : index
    %40 = vector.load %arg7[%c0_15, %c17] : memref<4x290xf32, #tpu.memory_space<vmem>>, vector<4x256xf32>
    tpu.vector_store %arg7[%c0_15, %c17], %36 {strides = array<i32>} : memref<4x290xf32, #tpu.memory_space<vmem>>, vector<4x256xf32>,
    %c0_16 = arith.constant 0 : index
    %c0_17 = arith.constant 0 : index
    %41 = vector.load %arg7[%c0_16, %c0_17] : memref<4x290xf32, #tpu.memory_space<vmem>>, vector<4x256xf32>
    %cst_18 = arith.constant 0.000000e+00 : f32
    %42 = vector.shape_cast %25 : vector<1x256xi1> to vector<1x256xi1>
    %43 = vector.broadcast %42 : vector<1x256xi1> to vector<4x256xi1>
    %44 = vector.broadcast %cst_18 : f32 to vector<4x256xf32>
    %45 = arith.select %43, %41, %44 : vector<4x256xi1>, vector<4x256xf32>
    %c0_19 = arith.constant 0 : index
    %c0_20 = arith.constant 0 : index
    %46 = vector.load %arg9[%c0_19, %c0_20] : memref<36x256xf32, #tpu.memory_space<vmem>>, vector<4x256xf32>
    tpu.vector_store %arg9[%c0_19, %c0_20], %45 {strides = array<i32>} : memref<36x256xf32, #tpu.memory_space<vmem>>, vector<4x256xf32>,
    %c0_21 = arith.constant 0 : index
    %c1 = arith.constant 1 : index
    %47 = vector.load %arg7[%c0_21, %c1] : memref<4x290xf32, #tpu.memory_space<vmem>>, vector<4x256xf32>
    %c4 = arith.constant 4 : index
    %c0_22 = arith.constant 0 : index
    %48 = vector.load %arg9[%c4, %c0_22] : memref<36x256xf32, #tpu.memory_space<vmem>>, vector<4x256xf32>
    tpu.vector_store %arg9[%c4, %c0_22], %47 {strides = array<i32>} : memref<36x256xf32, #tpu.memory_space<vmem>>, vector<4x256xf32>,
    %c0_23 = arith.constant 0 : index
    %c2 = arith.constant 2 : index
    %49 = vector.load %arg7[%c0_23, %c2] : memref<4x290xf32, #tpu.memory_space<vmem>>, vector<4x256xf32>
    %cst_24 = arith.constant 0.000000e+00 : f32
    %50 = vector.shape_cast %34 : vector<1x256xi1> to vector<1x256xi1>
    %51 = vector.broadcast %50 : vector<1x256xi1> to vector<4x256xi1>
    %52 = vector.broadcast %cst_24 : f32 to vector<4x256xf32>
    %53 = arith.select %51, %49, %52 : vector<4x256xi1>, vector<4x256xf32>
    %c8 = arith.constant 8 : index
    %c0_25 = arith.constant 0 : index
    %54 = vector.load %arg9[%c8, %c0_25] : memref<36x256xf32, #tpu.memory_space<vmem>>, vector<4x256xf32>
    tpu.vector_store %arg9[%c8, %c0_25], %53 {strides = array<i32>} : memref<36x256xf32, #tpu.memory_space<vmem>>, vector<4x256xf32>,
    %c0_26 = arith.constant 0 : index
    %c16 = arith.constant 16 : index
    %55 = vector.load %arg7[%c0_26, %c16] : memref<4x290xf32, #tpu.memory_space<vmem>>, vector<4x256xf32>
    %cst_27 = arith.constant 0.000000e+00 : f32
    %56 = vector.shape_cast %25 : vector<1x256xi1> to vector<1x256xi1>
    %57 = vector.broadcast %56 : vector<1x256xi1> to vector<4x256xi1>
    %58 = vector.broadcast %cst_27 : f32 to vector<4x256xf32>
    %59 = arith.select %57, %55, %58 : vector<4x256xi1>, vector<4x256xf32>
    %c12 = arith.constant 12 : index
    %c0_28 = arith.constant 0 : index
    %60 = vector.load %arg9[%c12, %c0_28] : memref<36x256xf32, #tpu.memory_space<vmem>>, vector<4x256xf32>
    tpu.vector_store %arg9[%c12, %c0_28], %59 {strides = array<i32>} : memref<36x256xf32, #tpu.memory_space<vmem>>, vector<4x256xf32>,
    %c0_29 = arith.constant 0 : index
    %c17_30 = arith.constant 17 : index
    %61 = vector.load %arg7[%c0_29, %c17_30] : memref<4x290xf32, #tpu.memory_space<vmem>>, vector<4x256xf32>
    %c16_31 = arith.constant 16 : index
    %c0_32 = arith.constant 0 : index
    %62 = vector.load %arg9[%c16_31, %c0_32] : memref<36x256xf32, #tpu.memory_space<vmem>>, vector<4x256xf32>
    tpu.vector_store %arg9[%c16_31, %c0_32], %61 {strides = array<i32>} : memref<36x256xf32, #tpu.memory_space<vmem>>, vector<4x256xf32>,
    %c0_33 = arith.constant 0 : index
    %c18 = arith.constant 18 : index
    %63 = vector.load %arg7[%c0_33, %c18] : memref<4x290xf32, #tpu.memory_space<vmem>>, vector<4x256xf32>
    %cst_34 = arith.constant 0.000000e+00 : f32
    %64 = vector.shape_cast %34 : vector<1x256xi1> to vector<1x256xi1>
    %65 = vector.broadcast %64 : vector<1x256xi1> to vector<4x256xi1>
    %66 = vector.broadcast %cst_34 : f32 to vector<4x256xf32>
    %67 = arith.select %65, %63, %66 : vector<4x256xi1>, vector<4x256xf32>
    %c20 = arith.constant 20 : index
    %c0_35 = arith.constant 0 : index
    %68 = vector.load %arg9[%c20, %c0_35] : memref<36x256xf32, #tpu.memory_space<vmem>>, vector<4x256xf32>
    tpu.vector_store %arg9[%c20, %c0_35], %67 {strides = array<i32>} : memref<36x256xf32, #tpu.memory_space<vmem>>, vector<4x256xf32>,
    %c0_36 = arith.constant 0 : index
    %c32 = arith.constant 32 : index
    %69 = vector.load %arg7[%c0_36, %c32] : memref<4x290xf32, #tpu.memory_space<vmem>>, vector<4x256xf32>
    %cst_37 = arith.constant 0.000000e+00 : f32
    %70 = vector.shape_cast %25 : vector<1x256xi1> to vector<1x256xi1>
    %71 = vector.broadcast %70 : vector<1x256xi1> to vector<4x256xi1>
    %72 = vector.broadcast %cst_37 : f32 to vector<4x256xf32>
    %73 = arith.select %71, %69, %72 : vector<4x256xi1>, vector<4x256xf32>
    %c24 = arith.constant 24 : index
    %c0_38 = arith.constant 0 : index
    %74 = vector.load %arg9[%c24, %c0_38] : memref<36x256xf32, #tpu.memory_space<vmem>>, vector<4x256xf32>
    tpu.vector_store %arg9[%c24, %c0_38], %73 {strides = array<i32>} : memref<36x256xf32, #tpu.memory_space<vmem>>, vector<4x256xf32>,
    %c0_39 = arith.constant 0 : index
    %c33 = arith.constant 33 : index
    %75 = vector.load %arg7[%c0_39, %c33] : memref<4x290xf32, #tpu.memory_space<vmem>>, vector<4x256xf32>
    %c28 = arith.constant 28 : index
    %c0_40 = arith.constant 0 : index
    %76 = vector.load %arg9[%c28, %c0_40] : memref<36x256xf32, #tpu.memory_space<vmem>>, vector<4x256xf32>
    tpu.vector_store %arg9[%c28, %c0_40], %75 {strides = array<i32>} : memref<36x256xf32, #tpu.memory_space<vmem>>, vector<4x256xf32>,
    %c0_41 = arith.constant 0 : index
    %c34 = arith.constant 34 : index
    %77 = vector.load %arg7[%c0_41, %c34] : memref<4x290xf32, #tpu.memory_space<vmem>>, vector<4x256xf32>
    %cst_42 = arith.constant 0.000000e+00 : f32
    %78 = vector.shape_cast %34 : vector<1x256xi1> to vector<1x256xi1>
    %79 = vector.broadcast %78 : vector<1x256xi1> to vector<4x256xi1>
    %80 = vector.broadcast %cst_42 : f32 to vector<4x256xf32>
    %81 = arith.select %79, %77, %80 : vector<4x256xi1>, vector<4x256xf32>
    %c32_43 = arith.constant 32 : index
    %c0_44 = arith.constant 0 : index
    %82 = vector.load %arg9[%c32_43, %c0_44] : memref<36x256xf32, #tpu.memory_space<vmem>>, vector<4x256xf32>
    tpu.vector_store %arg9[%c32_43, %c0_44], %81 {strides = array<i32>} : memref<36x256xf32, #tpu.memory_space<vmem>>, vector<4x256xf32>,
    %c0_45 = arith.constant 0 : index
    %c0_46 = arith.constant 0 : index
    %83 = vector.load %arg3[%c0_45, %c0_46] : memref<7x36xf32, #tpu.memory_space<vmem>>, vector<7x36xf32>
    %c0_47 = arith.constant 0 : index
    %c0_48 = arith.constant 0 : index
    %84 = vector.load %arg9[%c0_47, %c0_48] : memref<36x256xf32, #tpu.memory_space<vmem>>, vector<36x256xf32>
    %cst_49 = arith.constant dense<0.000000e+00> : vector<7x256xf32>
    %85 = tpu.matmul %83, %84, %cst_49 {dimension_numbers = #tpu.dot_dimension_numbers<[1], [0], [0], [1], [0, 0, 1, 1], [], []>} : vector<7x36xf32>, vector<36x256xf32>, vector<7x256xf32> -> vector<7x256xf32>
    %86 = vector.extract_strided_slice %85 {offsets = [0, 0], sizes = [4, 256], strides = [1, 1]} : vector<7x256xf32> to vector<4x256xf32>
    %87 = vector.extract_strided_slice %85 {offsets = [4, 0], sizes = [3, 256], strides = [1, 1]} : vector<7x256xf32> to vector<3x256xf32>
    %c0_50 = arith.constant 0 : index
    %c0_51 = arith.constant 0 : index
    %c0_52 = arith.constant 0 : index
    %88 = vector.load %arg2[%c0_50, %c0_51, %c0_52] : memref<1x3x256xf32, #tpu.memory_space<vmem>>, vector<1x3x256xf32>
    %89 = vector.shape_cast %88 : vector<1x3x256xf32> to vector<3x256xf32>
    %90 = arith.addf %87, %89 : vector<3x256xf32>
    %c0_53 = arith.constant 0 : index
    %c0_54 = arith.constant 0 : index
    %c0_55 = arith.constant 0 : index
    %91 = vector.load %arg6[%c0_53, %c0_54, %c0_55] : memref<1x3x256xf32, #tpu.memory_space<vmem>>, vector<1x3x256xf32>
    %92 = vector.shape_cast %91 : vector<1x3x256xf32> to vector<3x256xf32>
    %93 = vector.shape_cast %90 : vector<3x256xf32> to vector<1x3x256xf32>
    tpu.vector_store %arg6[%c0_53, %c0_54, %c0_55], %93 {strides = array<i32>} : memref<1x3x256xf32, #tpu.memory_space<vmem>>, vector<1x3x256xf32>,
    %cst_56 = arith.constant 0.000000e+00 : f32
    %94 = vector.broadcast %cst_56 : f32 to vector<3x17xf32>
    %c0_57 = arith.constant 0 : index
    %c0_58 = arith.constant 0 : index
    %95 = vector.load %arg8[%c0_57, %c0_58] : memref<3x290xf32, #tpu.memory_space<vmem>>, vector<3x17xf32>
    tpu.vector_store %arg8[%c0_57, %c0_58], %94 {strides = array<i32>} : memref<3x290xf32, #tpu.memory_space<vmem>>, vector<3x17xf32>,
    %c0_59 = arith.constant 0 : index
    %c273_60 = arith.constant 273 : index
    %96 = vector.load %arg8[%c0_59, %c273_60] : memref<3x290xf32, #tpu.memory_space<vmem>>, vector<3x17xf32>
    tpu.vector_store %arg8[%c0_59, %c273_60], %94 {strides = array<i32>} : memref<3x290xf32, #tpu.memory_space<vmem>>, vector<3x17xf32>,
    %c0_61 = arith.constant 0 : index
    %c17_62 = arith.constant 17 : index
    %97 = vector.load %arg8[%c0_61, %c17_62] : memref<3x290xf32, #tpu.memory_space<vmem>>, vector<3x256xf32>
    tpu.vector_store %arg8[%c0_61, %c17_62], %90 {strides = array<i32>} : memref<3x290xf32, #tpu.memory_space<vmem>>, vector<3x256xf32>,
    %c0_63 = arith.constant 0 : index
    %c0_64 = arith.constant 0 : index
    %98 = vector.load %arg8[%c0_63, %c0_64] : memref<3x290xf32, #tpu.memory_space<vmem>>, vector<3x256xf32>
    %cst_65 = arith.constant 0.000000e+00 : f32
    %99 = vector.shape_cast %25 : vector<1x256xi1> to vector<1x256xi1>
    %100 = vector.broadcast %99 : vector<1x256xi1> to vector<3x256xi1>
    %101 = vector.broadcast %cst_65 : f32 to vector<3x256xf32>
    %102 = arith.select %100, %98, %101 : vector<3x256xi1>, vector<3x256xf32>
    %c0_66 = arith.constant 0 : index
    %c0_67 = arith.constant 0 : index
    %103 = vector.load %arg10[%c0_66, %c0_67] : memref<27x256xf32, #tpu.memory_space<vmem>>, vector<3x256xf32>
    tpu.vector_store %arg10[%c0_66, %c0_67], %102 {strides = array<i32>} : memref<27x256xf32, #tpu.memory_space<vmem>>, vector<3x256xf32>,
    %c0_68 = arith.constant 0 : index
    %c1_69 = arith.constant 1 : index
    %104 = vector.load %arg8[%c0_68, %c1_69] : memref<3x290xf32, #tpu.memory_space<vmem>>, vector<3x256xf32>
    %c3 = arith.constant 3 : index
    %c0_70 = arith.constant 0 : index
    %105 = vector.load %arg10[%c3, %c0_70] : memref<27x256xf32, #tpu.memory_space<vmem>>, vector<3x256xf32>
    tpu.vector_store %arg10[%c3, %c0_70], %104 {strides = array<i32>} : memref<27x256xf32, #tpu.memory_space<vmem>>, vector<3x256xf32>,
    %c0_71 = arith.constant 0 : index
    %c2_72 = arith.constant 2 : index
    %106 = vector.load %arg8[%c0_71, %c2_72] : memref<3x290xf32, #tpu.memory_space<vmem>>, vector<3x256xf32>
    %cst_73 = arith.constant 0.000000e+00 : f32
    %107 = vector.shape_cast %34 : vector<1x256xi1> to vector<1x256xi1>
    %108 = vector.broadcast %107 : vector<1x256xi1> to vector<3x256xi1>
    %109 = vector.broadcast %cst_73 : f32 to vector<3x256xf32>
    %110 = arith.select %108, %106, %109 : vector<3x256xi1>, vector<3x256xf32>
    %c6 = arith.constant 6 : index
    %c0_74 = arith.constant 0 : index
    %111 = vector.load %arg10[%c6, %c0_74] : memref<27x256xf32, #tpu.memory_space<vmem>>, vector<3x256xf32>
    tpu.vector_store %arg10[%c6, %c0_74], %110 {strides = array<i32>} : memref<27x256xf32, #tpu.memory_space<vmem>>, vector<3x256xf32>,
    %c0_75 = arith.constant 0 : index
    %c16_76 = arith.constant 16 : index
    %112 = vector.load %arg8[%c0_75, %c16_76] : memref<3x290xf32, #tpu.memory_space<vmem>>, vector<3x256xf32>
    %cst_77 = arith.constant 0.000000e+00 : f32
    %113 = vector.shape_cast %25 : vector<1x256xi1> to vector<1x256xi1>
    %114 = vector.broadcast %113 : vector<1x256xi1> to vector<3x256xi1>
    %115 = vector.broadcast %cst_77 : f32 to vector<3x256xf32>
    %116 = arith.select %114, %112, %115 : vector<3x256xi1>, vector<3x256xf32>
    %c9 = arith.constant 9 : index
    %c0_78 = arith.constant 0 : index
    %117 = vector.load %arg10[%c9, %c0_78] : memref<27x256xf32, #tpu.memory_space<vmem>>, vector<3x256xf32>
    tpu.vector_store %arg10[%c9, %c0_78], %116 {strides = array<i32>} : memref<27x256xf32, #tpu.memory_space<vmem>>, vector<3x256xf32>,
    %c0_79 = arith.constant 0 : index
    %c17_80 = arith.constant 17 : index
    %118 = vector.load %arg8[%c0_79, %c17_80] : memref<3x290xf32, #tpu.memory_space<vmem>>, vector<3x256xf32>
    %c12_81 = arith.constant 12 : index
    %c0_82 = arith.constant 0 : index
    %119 = vector.load %arg10[%c12_81, %c0_82] : memref<27x256xf32, #tpu.memory_space<vmem>>, vector<3x256xf32>
    tpu.vector_store %arg10[%c12_81, %c0_82], %118 {strides = array<i32>} : memref<27x256xf32, #tpu.memory_space<vmem>>, vector<3x256xf32>,
    %c0_83 = arith.constant 0 : index
    %c18_84 = arith.constant 18 : index
    %120 = vector.load %arg8[%c0_83, %c18_84] : memref<3x290xf32, #tpu.memory_space<vmem>>, vector<3x256xf32>
    %cst_85 = arith.constant 0.000000e+00 : f32
    %121 = vector.shape_cast %34 : vector<1x256xi1> to vector<1x256xi1>
    %122 = vector.broadcast %121 : vector<1x256xi1> to vector<3x256xi1>
    %123 = vector.broadcast %cst_85 : f32 to vector<3x256xf32>
    %124 = arith.select %122, %120, %123 : vector<3x256xi1>, vector<3x256xf32>
    %c15 = arith.constant 15 : index
    %c0_86 = arith.constant 0 : index
    %125 = vector.load %arg10[%c15, %c0_86] : memref<27x256xf32, #tpu.memory_space<vmem>>, vector<3x256xf32>
    tpu.vector_store %arg10[%c15, %c0_86], %124 {strides = array<i32>} : memref<27x256xf32, #tpu.memory_space<vmem>>, vector<3x256xf32>,
    %c0_87 = arith.constant 0 : index
    %c32_88 = arith.constant 32 : index
    %126 = vector.load %arg8[%c0_87, %c32_88] : memref<3x290xf32, #tpu.memory_space<vmem>>, vector<3x256xf32>
    %cst_89 = arith.constant 0.000000e+00 : f32
    %127 = vector.shape_cast %25 : vector<1x256xi1> to vector<1x256xi1>
    %128 = vector.broadcast %127 : vector<1x256xi1> to vector<3x256xi1>
    %129 = vector.broadcast %cst_89 : f32 to vector<3x256xf32>
    %130 = arith.select %128, %126, %129 : vector<3x256xi1>, vector<3x256xf32>
    %c18_90 = arith.constant 18 : index
    %c0_91 = arith.constant 0 : index
    %131 = vector.load %arg10[%c18_90, %c0_91] : memref<27x256xf32, #tpu.memory_space<vmem>>, vector<3x256xf32>
    tpu.vector_store %arg10[%c18_90, %c0_91], %130 {strides = array<i32>} : memref<27x256xf32, #tpu.memory_space<vmem>>, vector<3x256xf32>,
    %c0_92 = arith.constant 0 : index
    %c33_93 = arith.constant 33 : index
    %132 = vector.load %arg8[%c0_92, %c33_93] : memref<3x290xf32, #tpu.memory_space<vmem>>, vector<3x256xf32>
    %c21 = arith.constant 21 : index
    %c0_94 = arith.constant 0 : index
    %133 = vector.load %arg10[%c21, %c0_94] : memref<27x256xf32, #tpu.memory_space<vmem>>, vector<3x256xf32>
    tpu.vector_store %arg10[%c21, %c0_94], %132 {strides = array<i32>} : memref<27x256xf32, #tpu.memory_space<vmem>>, vector<3x256xf32>,
    %c0_95 = arith.constant 0 : index
    %c34_96 = arith.constant 34 : index
    %134 = vector.load %arg8[%c0_95, %c34_96] : memref<3x290xf32, #tpu.memory_space<vmem>>, vector<3x256xf32>
    %cst_97 = arith.constant 0.000000e+00 : f32
    %135 = vector.shape_cast %34 : vector<1x256xi1> to vector<1x256xi1>
    %136 = vector.broadcast %135 : vector<1x256xi1> to vector<3x256xi1>
    %137 = vector.broadcast %cst_97 : f32 to vector<3x256xf32>
    %138 = arith.select %136, %134, %137 : vector<3x256xi1>, vector<3x256xf32>
    %c24_98 = arith.constant 24 : index
    %c0_99 = arith.constant 0 : index
    %139 = vector.load %arg10[%c24_98, %c0_99] : memref<27x256xf32, #tpu.memory_space<vmem>>, vector<3x256xf32>
    tpu.vector_store %arg10[%c24_98, %c0_99], %138 {strides = array<i32>} : memref<27x256xf32, #tpu.memory_space<vmem>>, vector<3x256xf32>,
    %c0_100 = arith.constant 0 : index
    %c0_101 = arith.constant 0 : index
    %140 = vector.load %arg4[%c0_100, %c0_101] : memref<4x27xf32, #tpu.memory_space<vmem>>, vector<4x27xf32>
    %c0_102 = arith.constant 0 : index
    %c0_103 = arith.constant 0 : index
    %141 = vector.load %arg10[%c0_102, %c0_103] : memref<27x256xf32, #tpu.memory_space<vmem>>, vector<27x256xf32>
    %cst_104 = arith.constant dense<0.000000e+00> : vector<4x256xf32>
    %142 = tpu.matmul %140, %141, %cst_104 {dimension_numbers = #tpu.dot_dimension_numbers<[1], [0], [0], [1], [0, 0, 1, 1], [], []>} : vector<4x27xf32>, vector<27x256xf32>, vector<4x256xf32> -> vector<4x256xf32>
    %143 = arith.negf %142 : vector<4x256xf32>
    %144 = math.exp %143 : vector<4x256xf32>
    %cst_105 = arith.constant 1.000000e+00 : f32
    %145 = vector.broadcast %cst_105 : f32 to vector<4x256xf32>
    %146 = arith.addf %145, %144 : vector<4x256xf32>
    %147 = arith.divf %145, %146 : vector<4x256xf32>
    %148 = arith.mulf %86, %147 : vector<4x256xf32>
    %149 = arith.addf %148, %36 : vector<4x256xf32>
    %c0_106 = arith.constant 0 : index
    %c0_107 = arith.constant 0 : index
    %c0_108 = arith.constant 0 : index
    %150 = vector.load %arg5[%c0_106, %c0_107, %c0_108] : memref<1x4x256xf32, #tpu.memory_space<vmem>>, vector<1x4x256xf32>
    %151 = vector.shape_cast %150 : vector<1x4x256xf32> to vector<4x256xf32>
    %152 = vector.shape_cast %149 : vector<4x256xf32> to vector<1x4x256xf32>
    tpu.vector_store %arg5[%c0_106, %c0_107, %c0_108], %152 {strides = array<i32>} : memref<1x4x256xf32, #tpu.memory_space<vmem>>, vector<1x4x256xf32>,
    return
  }
  func.func @transform_0(%arg0: i32) -> (i32, i32, i32) {
    %c0_i32 = arith.constant 0 : i32
    %c0_i32_0 = arith.constant 0 : i32
    %c0_i32_1 = arith.constant 0 : i32
    return %arg0, %c0_i32, %c0_i32_0 : i32, i32, i32
  }
  func.func @transform_1(%arg0: i32) -> (i32, i32, i32) {
    %c0_i32 = arith.constant 0 : i32
    %c0_i32_0 = arith.constant 0 : i32
    %c0_i32_1 = arith.constant 0 : i32
    return %arg0, %c0_i32, %c0_i32_0 : i32, i32, i32
  }
  func.func @transform_2(%arg0: i32) -> (i32, i32) {
    %c0_i32 = arith.constant 0 : i32
    %c0_i32_0 = arith.constant 0 : i32
    %c0_i32_1 = arith.constant 0 : i32
    return %c0_i32, %c0_i32_0 : i32, i32
  }
  func.func @transform_3(%arg0: i32) -> (i32, i32) {
    %c0_i32 = arith.constant 0 : i32
    %c0_i32_0 = arith.constant 0 : i32
    %c0_i32_1 = arith.constant 0 : i32
    return %c0_i32, %c0_i32_0 : i32, i32
  }
  func.func @transform_4(%arg0: i32) -> (i32, i32, i32) {
    %c0_i32 = arith.constant 0 : i32
    %c0_i32_0 = arith.constant 0 : i32
    %c0_i32_1 = arith.constant 0 : i32
    return %arg0, %c0_i32, %c0_i32_0 : i32, i32, i32
  }
  func.func @transform_5(%arg0: i32) -> (i32, i32, i32) {
    %c0_i32 = arith.constant 0 : i32
    %c0_i32_0 = arith.constant 0 : i32
    %c0_i32_1 = arith.constant 0 : i32
    return %arg0, %c0_i32, %c0_i32_0 : i32, i32, i32
  }
}

</mosaic_0001>

<bundles_post_ra>
// kernel: tpu_custom_call.1
= control target key start
LH: loop header
LB: loop body
LE: loop exit
PB: predicated region body
PF: predicated region fallthrough
CT: control target
= control target key end

     0   :  { %11 = vsyncpa [#allocation7], 0  ;;  %s1623_s0 = inlined_call_operand.vmem [shape: f32[2,4,256], index: 0, kind: input, shape index: {}]   ;;  %s1624_s1 = inlined_call_operand.vmem [shape: f32[2,3,256], index: 1, kind: input, shape index: {}]   ;;  %s1625_s2 = inlined_call_operand.vmem [shape: f32[7,36], index: 2, kind: input, shape index: {}]   ;;  %s1626_s3 = inlined_call_operand.vmem [shape: f32[4,27], index: 3, kind: input, shape index: {}]   ;;  %s1627_s4 = inlined_call_operand.hbm [shape: f32[2,4,256], index: 4, kind: output, shape index: {0}]   ;;  %s1628_s5 = inlined_call_operand.vmem [shape: f32[2,3,256], index: 5, kind: output, shape index: {1}]  }
   0x1   :  { %13 = vsyncpa [#allocation7 + $0x1], 0  ;;  %s1300_s18 = smov 0   ;;  %s1302_s19 = smov 0  }
   0x2   :  { %s1304_s20 = smov 0   ;;  %s1306_s21 = smov 0  }
   0x3 LB: > { %s1321_s22 = sadd.s32 4294967295, %s1258_s21   ;;  %s1109_s23 = sadd.s32 4294967294, %s1258_s21   ;;  %s1258_s21 = sphi %s1306_s21, %s1639_s21   ;;  %s1254_s20 = sphi %s1304_s20, %s1638_s20   ;;  %s1250_s19 = sphi %s1302_s19, %s1637_s19   ;;  %s1246_s18 = sphi %s1300_s18, %s1636_s18  }
   0x4   : > { %s1325_s24 = sadd.s32 1, %s1258_s21   ;;  %s120_s25 = sadd.s32 1, %s1254_s20 }
   0x5   : > { %s117_s26 = ssub.s32 %s1258_s21, %s1325_s24  ;;  %p130_p0 = scmp.ne.s32.totalorder %s1254_s20, %s1250_s19 }
   0x6   : > { %p118_p1 = scmp.eq.s32.totalorder %s117_s26, 0  ;;  %p131_p2 = scmp.eq.s32.totalorder %s1321_s22, 1 }
   0x7   : > { %p136_p3 = scmp.ne.s32.totalorder %s1250_s19, %s1246_s18  ;;  %p137_p4 = scmp.eq.s32.totalorder %s1109_s23, 1 }
   0x8   : > { %s1336_s27 = scalar_select %p118_p1, %s1254_s20, %s120_s25  }
   0x9   : > { %p1338_p5 = por %p131_p2, %p130_p0  ;;  %p1342_p6 = por %p137_p4, %p136_p3 }
   0xa   : > { %p1112_p7 = scmp.ge.s32.totalorder %s1258_s21, 1  ;;  %p203_p8 = scmp.lt.s32.totalorder %s1258_s21, 3 }
   0xc   : > { %p204_p9 = pnand %p1112_p7, %p203_p8 }
   0xd   : > { %p241_p10 = scmp.lt.s32.totalorder (!%p204_p9), %s1321_s22, 1  ;;  %s1261_s10 = smov (!%p204_p9), 17  }
   0xe   : > { %207 = sbr.rel (%p204_p9) target bundleno = 1033 (0x409), region = 36  ;;  %s1262_s11 = smov (!%p204_p9), 112  }
   0xf   : > { %s1263_s12 = smov (!%p204_p9), 111   ;;  %s1264_s13 = smov (!%p204_p9), 110  }
  0x10   : > { %s1265_s14 = smov (!%p204_p9), 96   ;;  %s1266_s15 = smov (!%p204_p9), 95  }
  0x11   : > { %s1267_s16 = smov (!%p204_p9), 94   ;;  %s1268_s26 = smov (!%p204_p9), 126  }
  0x13   : > { %vm300_vm0 = vcmask 134144   ;;  %vm302_vm1 = vcmask 273544   ;;  %v1260_v0 = vmov 0.0   ;;  %s242_s30 = scalar_select %p241_p10, %s1321_s22, 1  ;;  %v256_v2 = vlaneseq }
  0x14   : > { %301 = vst.msk [vmem:[#allocation2] sm:$0xf] %vm300_vm0, %v1260_v0  ;;  %vm312_vm2 = vcmask 1043592   ;;  %vm313_vm3 = vcmask 1047556   ;;  %vm308_vm4 = vcmask 138240   ;;  %vm401_vm8 = vcmask 916480  }
  0x15   : > { %303 = vst.msk [vmem:[#allocation2 + $0x8] sm:$0xf] %vm302_vm1, %v1260_v0  ;;  %s1353_s6 = sshll.u32 %s242_s30, 3  ;;  %vm314_vm5 = vmor %vm313_vm3, %vm312_vm2  ;;  %v1363_v5 = vand.u32 127, %v256_v2  ;;  %s1269_s30 = smov 127   ;;  %vm455_vm9 = vcmask 900096  }
  0x16   : > { %s245_s9 = scalar_lea.vmem %s1623_s0, %s1353_s6  ;;  %s250_s25 = scalar_lea.vmem %s1624_s1, %s1353_s6  ;;  %vm432_vm10 = vcmask 908288   ;;  %vm486_vm13 = vcmask 785408   ;;  %vm512_vm14 = vcmask 777216   ;;  %vm376_vm15 = vcmask 1031168  }
  0x17   : > { %v1359_v1 = vld [vmem:[%s245_s9] sm:$0xff]  ;;  %v1368_v7 = vadd.s32 128, %v1363_v5  ;;  %v263_v9 = vand.u32 15, %v1363_v5  ;;  %vm1630_vm1 = vcmask 1039360   ;;  %vm1629_vm2 = vcmask 1043456   ;;  %s255_s23 = scalar_lea.vmem %s1628_s5, %s1353_s6 }
  0x18   : > { %305 = vrot.lane.b32.xlu0 %v1359_v1, %s1261_s10  ;;  %v606_v47 = vld [vmem:[%s250_s25] sm:$0x77]  ;;  %vm555_vm3 = vcmask 293888  }
  0x19   : > { %v270_v8 = vand.u32 15, %v1368_v7  ;;  %v1381_v13 = vadd.s32 4294967295, %v263_v9  ;;  %v1445_v56 = vadd.s32 1, %v263_v9 }
  0x1b   : > { %v1377_v12 = vadd.s32 4294967295, %v270_v8  ;;  %vm285_vm7 = vcmp.ge.s32.totalorder %v1381_v13, 0  ;;  %vm295_vm11 = vcmp.lt.s32.totalorder %v1445_v56, 16 }
  0x1d   : > { %vm286_vm6 = vcmp.ge.s32.totalorder %v1377_v12, 0 }
  0x8a   : > { %v306_v3 = vpop.permute.xlu0 %305 }
  0x8b   : > { %v307_v4 = vrot.slane %v306_v3, 4 }
  0x8d   : > { %v309_v6 = vsel %vm308_vm4, %v307_v4, %v306_v3  ;;  %316 = vst.msk [vmem:[#allocation2 + $0x8] sm:$0xf] %vm300_vm0, %v307_v4  ;;  %vm535_vm0 = vcmask 769024  }
  0x8e   : > { %315 = vst.msk [vmem:[#allocation2] sm:$0xff] %vm314_vm5, %v309_v6  ;;  %v1457_v6 = vadd.s32 1, %v270_v8  ;;  %vm624_vm5 = vcmask 133120  }
  0x8f   : > { %625 = vst.msk [vmem:[#allocation3] sm:$0x7] %vm624_vm5, %v1260_v0 }
  0x90   : > { %vm296_vm12 = vcmp.lt.s32.totalorder %v1457_v6, 16 }
  0x94   : > { %v333_v10 = vld [vmem:[#allocation2 + $0x8] sm:$0xf] }
  0x95   : > { %v1372_v11 = vld [vmem:[#allocation2] sm:$0xff]  ;;  %339 = vst [vmem:[#allocation1 + $0x11] ss:$2 sm:$0xff] %v333_v10  ;;  %v357_v17 = vld [vmem:[#allocation2 + $0x8] sm:$0xf] }
  0x96   : > { %323 = vst [vmem:[#allocation1] ss:$2 sm:$0xff] %v1372_v11  ;;  %v386_v20 = vld [vmem:[#allocation2 + $0x8] sm:$0xf] }
  0x97   : > { %v417_v24 = vld [vmem:[#allocation2 + $0x8] sm:$0xf] }
  0x98   : > { %v440_v28 = vld [vmem:[#allocation2 + $0x8] sm:$0xf] }
  0x99   : > { %v471_v32 = vld [vmem:[#allocation2 + $0x8] sm:$0xf] }
  0x9a   : > { %v496_v36 = vld [vmem:[#allocation2 + $0x8] sm:$0xf] }
  0x9b   : > { %v520_v40 = vld [vmem:[#allocation2 + $0x8] sm:$0xf] }
  0x9c   : > { %v1385_v14 = vld.sshfl [vmem:[#allocation1 + $0x10] sm:$0xff pattern:$0x75316420] }
  0x9d   : > { %v324_v15 = vld.sshfl [vmem:[#allocation1] sm:$0xff pattern:$0x75316420]  ;;  %v325_v16 = vld.sshfl [vmem:[#allocation1 + $0x8] sm:$0xff pattern:$0x75316420] }
  0x9e   : > { %337 = vst [vmem:[#allocation1 + $0x1] ss:$2 sm:$0xff] %v1372_v11  ;;  %v329_v18 = vsel %vm286_vm6, %v325_v16, 0.0  ;;  %v328_v19 = vsel %vm285_vm7, %v324_v15, 0.0 }
  0x9f   : > { %366 = vst [vmem:[#allocation1 + $0x10] ss:$2 sm:$0xff] %v357_v17 }
  0xa0   : > { %331 = vst [vmem:[#allocation4] sm:$0xf] %v329_v18 }
  0xa1   : > { %330 = vst [vmem:[#allocation4 + $0x30] sm:$0xf] %v328_v19 }
  0xa5   : > { %v1392_v21 = vld.sshfl [vmem:[#allocation1] sm:$0xff pattern:$0x75316420]  ;;  %v1394_v22 = vld.sshfl [vmem:[#allocation1 + $0x8] sm:$0xff pattern:$0x75316420] }
  0xa6   : > { %364 = vst [vmem:[#allocation1] ss:$2 sm:$0xff] %v1372_v11  ;;  %v1397_v23 = vld.sshfl [vmem:[#allocation1 + $0x10] sm:$0xff pattern:$0x75316420] }
  0xa7   : > { %391 = vst [vmem:[#allocation1 + $0x10] ss:$2 sm:$0xff] %v386_v20 }
  0xad   : > { %v1399_v25 = vld.sshfl [vmem:[#allocation1] sm:$0xff pattern:$0x75316420]  ;;  %v368_v26 = vld.sshfl [vmem:[#allocation1 + $0x8] sm:$0xff pattern:$0x75316420] }
  0xae   : > { %v394_v27 = vld.sshfl [vmem:[#allocation1 + $0x10] sm:$0xff pattern:$0x75316420]  ;;  %389 = vst [vmem:[#allocation1] ss:$2 sm:$0xff] %v1372_v11 }
  0xaf   : > { %422 = vst [vmem:[#allocation1 + $0x10] ss:$2 sm:$0xff] %v417_v24  ;;  %399 = vrot.lane.b32.xlu0 %v394_v27, %s1262_s11 }
  0xb5   : > { %v393_v29 = vld.sshfl [vmem:[#allocation1 + $0x8] sm:$0xff pattern:$0x75316420]  ;;  %v392_v30 = vld.sshfl [vmem:[#allocation1] sm:$0xff pattern:$0x75316420] }
  0xb6   : > { %v425_v31 = vld.sshfl [vmem:[#allocation1 + $0x10] sm:$0xff pattern:$0x75316420]  ;;  %397 = vrot.lane.b32.xlu2 %v393_v29, %s1262_s11  ;;  %395 = vrot.lane.b32.xlu1 %v392_v30, %s1262_s11  ;;  %420 = vst [vmem:[#allocation1] ss:$2 sm:$0xff] %v1372_v11 }
  0xb7   : > { %430 = vrot.lane.b32.xlu0 %v425_v31, %s1263_s12  ;;  %445 = vst [vmem:[#allocation1 + $0x10] ss:$2 sm:$0xff] %v440_v28 }
  0xbd   : > { %v424_v33 = vld.sshfl [vmem:[#allocation1 + $0x8] sm:$0xff pattern:$0x75316420]  ;;  %v423_v34 = vld.sshfl [vmem:[#allocation1] sm:$0xff pattern:$0x75316420] }
  0xbe   : > { %v448_v35 = vld.sshfl [vmem:[#allocation1 + $0x10] sm:$0xff pattern:$0x75316420]  ;;  %428 = vrot.lane.b32.xlu2 %v424_v33, %s1263_s12  ;;  %426 = vrot.lane.b32.xlu1 %v423_v34, %s1263_s12  ;;  %443 = vst [vmem:[#allocation1] ss:$2 sm:$0xff] %v1372_v11 }
  0xbf   : > { %453 = vrot.lane.b32.xlu0 %v448_v35, %s1264_s13  ;;  %476 = vst [vmem:[#allocation1 + $0x10] ss:$2 sm:$0xff] %v471_v32 }
  0xc5   : > { %v446_v37 = vld.sshfl [vmem:[#allocation1] sm:$0xff pattern:$0x75316420]  ;;  %v447_v38 = vld.sshfl [vmem:[#allocation1 + $0x8] sm:$0xff pattern:$0x75316420] }
  0xc6   : > { %v479_v39 = vld.sshfl [vmem:[#allocation1 + $0x10] sm:$0xff pattern:$0x75316420]  ;;  %449 = vrot.lane.b32.xlu2 %v446_v37, %s1264_s13  ;;  %474 = vst [vmem:[#allocation1] ss:$2 sm:$0xff] %v1372_v11 }
  0xc7   : > { %484 = vrot.lane.b32.xlu0 %v479_v39, %s1265_s14  ;;  %502 = vst [vmem:[#allocation1 + $0x11] ss:$2 sm:$0xff] %v496_v36 }
  0xcd   : > { %v477_v41 = vld.sshfl [vmem:[#allocation1] sm:$0xff pattern:$0x75316420]  ;;  %v478_v42 = vld.sshfl [vmem:[#allocation1 + $0x8] sm:$0xff pattern:$0x75316420] }
  0xce   : > { %v505_v43 = vld.sshfl [vmem:[#allocation1 + $0x10] sm:$0xff pattern:$0x75316420]  ;;  %451 = vrot.lane.b32.xlu2 %v447_v38, %s1264_s13  ;;  %480 = vrot.lane.b32.xlu1 %v477_v41, %s1265_s14  ;;  %500 = vst [vmem:[#allocation1 + $0x1] ss:$2 sm:$0xff] %v1372_v11 }
  0xcf   : > { %510 = vrot.lane.b32.xlu0 %v505_v43, %s1266_s15  ;;  %525 = vst [vmem:[#allocation1 + $0x10] ss:$2 sm:$0xff] %v520_v40 }
  0xd5   : > { %v504_v44 = vld.sshfl [vmem:[#allocation1 + $0x8] sm:$0xff pattern:$0x75316420]  ;;  %v503_v45 = vld.sshfl [vmem:[#allocation1] sm:$0xff pattern:$0x75316420] }
  0xd6   : > { %482 = vrot.lane.b32.xlu2 %v478_v42, %s1265_s14  ;;  %v528_v46 = vld.sshfl [vmem:[#allocation1 + $0x10] sm:$0xff pattern:$0x75316420]  ;;  %523 = vst [vmem:[#allocation1] ss:$2 sm:$0xff] %v1372_v11 }
  0xd7   : > { %533 = vrot.lane.b32.xlu1 %v528_v46, %s1267_s16 }
  0xdd   : > { %v526_v48 = vld.sshfl [vmem:[#allocation1] sm:$0xff pattern:$0x75316420]  ;;  %v527_v49 = vld.sshfl [vmem:[#allocation1 + $0x8] sm:$0xff pattern:$0x75316420] }
  0xde   : > { %508 = vrot.lane.b32.xlu2 %v504_v44, %s1266_s15  ;;  %529 = vrot.lane.b32.xlu0 %v526_v48, %s1267_s16  ;;  %609 = vst [vmem:[#allocation1 + $0x1] ss:$2 sm:$0xff] %v606_v47 }
  0xdf   : > { %506 = vrot.lane.b32.xlu1 %v503_v45, %s1266_s15 }
  0xe6   : > { %372 = vrot.lane.b32.xlu2 %v368_v26, %s1268_s26  ;;  %374 = vrot.lane.b32.xlu0 %v1397_v23, %s1268_s26 }
  0xe7   : > { %531 = vrot.lane.b32.xlu1 %v527_v49, %s1267_s16 }
  0xee   : > { %345 = vrot.lane.b32.xlu2 %v1394_v22, %s1269_s30  ;;  %347 = vrot.lane.b32.xlu0 %v1385_v14, %s1269_s30 }
  0xef   : > { %370 = vrot.lane.b32.xlu1 %v1399_v25, %s1268_s26 }
  0xf7   : > { %343 = vrot.lane.b32.xlu1 %v1392_v21, %s1269_s30 }
 0x110   : > { %v398_v50 = vpop.permute.xlu2 %397 }
 0x118   : > { %v429_v51 = vpop.permute.xlu2 %428 }
 0x120   : > { %v450_v52 = vpop.permute.xlu2 %449 }
 0x121   : > { %v400_v53 = vpop.permute.xlu0 %399 }
 0x122   : > { %v403_v54 = vsel %vm401_vm8, %v398_v50, %v400_v53 }
 0x123   : > { %v407_v55 = vsel %vm286_vm6, %v403_v54, 0.0 }
 0x124   : > { %v411_v57 = vrot.slane %v407_v55, 4  ;;  %v544_v55 = vld [vmem:[%s1625_s2] sm:$0x7f] }
 0x126   : > { %415 = vst [vmem:[#allocation4 + $0x10] sm:$0xf0] %v411_v57 }
 0x128   : > { %v396_v58 = vpop.permute.xlu1 %395  ;;  %v452_v59 = vpop.permute.xlu2 %451 }
 0x129   : > { %v431_v60 = vpop.permute.xlu0 %430  ;;  %v402_v61 = vsel %vm401_vm8, %v396_v58, %v398_v50  ;;  %v456_v62 = vsel %vm455_vm9, %v450_v52, %v452_v59 }
 0x12a   : > { %v434_v63 = vsel %vm432_vm10, %v429_v51, %v431_v60  ;;  %v406_v2 = vsel %vm285_vm7, %v402_v61, 0.0  ;;  %v460_v3 = vsel %vm295_vm11, %v456_v62, 0.0  ;;  %v610_v62 = vld.sshfl [vmem:[#allocation1] sm:$0xff pattern:$0x75316420] }
 0x12b   : > { %438 = vst [vmem:[#allocation4 + $0x28] sm:$0xf] %v434_v63  ;;  %v410_v4 = vrot.slane %v406_v2, 4  ;;  %v464_v5 = vrot.slane %v460_v3, 4 }
 0x12d   : > { %414 = vst [vmem:[#allocation4 + $0x18] sm:$0xf0] %v410_v4 }
 0x12e   : > { %468 = vst [vmem:[#allocation4 + $0x48] sm:$0xf0] %v464_v5 }
 0x130   : > { %v427_v9 = vpop.permute.xlu1 %426  ;;  %v483_v17 = vpop.permute.xlu2 %482 }
 0x131   : > { %v454_v10 = vpop.permute.xlu0 %453  ;;  %v433_v11 = vsel %vm432_vm10, %v427_v9, %v429_v51 }
 0x132   : > { %v457_v14 = vsel %vm455_vm9, %v452_v59, %v454_v10  ;;  %437 = vst [vmem:[#allocation4 + $0x48] sm:$0xf] %v433_v11  ;;  %v611_v59 = vld.sshfl [vmem:[#allocation1 + $0x8] sm:$0xff pattern:$0x75316420] }
 0x133   : > { %v461_v15 = vsel %vm296_vm12, %v457_v14, 0.0 }
 0x134   : > { %v465_v16 = vrot.slane %v461_v15, 4 }
 0x136   : > { %469 = vst [vmem:[#allocation4 + $0x28] sm:$0xf0] %v465_v16 }
 0x138   : > { %v509_v20 = vpop.permute.xlu2 %508 }
 0x139   : > { %v485_v7 = vpop.permute.xlu0 %484  ;;  %v549_v48 = vld [vmem:[#allocation4 + $0x48] sm:$0xff] }
 0x13a   : > { %v488_v8 = vsel %vm486_vm13, %v483_v17, %v485_v7 }
 0x13b   : > { %v492_v18 = vsel %vm286_vm6, %v488_v8, 0.0 }
 0x13c   : > { %494 = vst [vmem:[#allocation4 + $0x20] sm:$0xf] %v492_v18 }
 0x13d   : > { %v550_v49 = vld [vmem:[#allocation4 + $0x28] sm:$0xff] }
 0x140   : > { %v481_v19 = vpop.permute.xlu1 %480  ;;  %v373_v29 = vpop.permute.xlu2 %372 }
 0x141   : > { %v511_v21 = vpop.permute.xlu0 %510  ;;  %v487_v22 = vsel %vm486_vm13, %v481_v19, %v483_v17 }
 0x142   : > { %v514_v23 = vsel %vm512_vm14, %v509_v20, %v511_v21  ;;  %v491_v24 = vsel %vm285_vm7, %v487_v22, 0.0 }
 0x143   : > { %518 = vst [vmem:[#allocation4 + $0x20] sm:$0xf0] %v514_v23 }
 0x144   : > { %493 = vst [vmem:[#allocation4 + $0x8] sm:$0xf] %v491_v24 }
 0x148   : > { %v346_v38 = vpop.permute.xlu2 %345 }
 0x149   : > { %v534_v25 = vpop.permute.xlu1 %533 }
 0x14a   : > { %v552_v47 = vld [vmem:[#allocation4 + $0x20] sm:$0xff] }
 0x150   : > { %v530_v26 = vpop.permute.xlu0 %529 }
 0x151   : > { %v507_v27 = vpop.permute.xlu1 %506 }
 0x152   : > { %v513_v28 = vsel %vm512_vm14, %v507_v27, %v509_v20 }
 0x153   : > { %517 = vst [vmem:[#allocation4 + $0x8] sm:$0xf0] %v513_v28 }
 0x158   : > { %v375_v30 = vpop.permute.xlu0 %374 }
 0x159   : > { %v532_v31 = vpop.permute.xlu1 %531  ;;  %v378_v32 = vsel %vm376_vm15, %v373_v29, %v375_v30 }
 0x15a   : > { %v536_v33 = vsel %vm535_vm0, %v530_v26, %v532_v31  ;;  %v537_v34 = vsel %vm535_vm0, %v532_v31, %v534_v25  ;;  %v382_v35 = vsel %vm296_vm12, %v378_v32, 0.0  ;;  %v551_v46 = vld [vmem:[#allocation4 + $0x8] sm:$0xff] }
 0x15b   : > { %v540_v36 = vsel %vm295_vm11, %v536_v33, 0.0  ;;  %v541_v37 = vsel %vm296_vm12, %v537_v34, 0.0  ;;  %384 = vst [vmem:[#allocation4 + $0x10] sm:$0xf] %v382_v35 }
 0x15c   : > { %542 = vst [vmem:[#allocation4 + $0x40] sm:$0xf] %v540_v36 }
 0x15d   : > { %543 = vst [vmem:[#allocation4 + $0x38] sm:$0xf] %v541_v37 }
 0x160   : > { %v348_v39 = vpop.permute.xlu0 %347 }
 0x161   : > { %v371_v40 = vpop.permute.xlu1 %370  ;;  %v351_v41 = vsel %vm1630_vm1, %v346_v38, %v348_v39 }
 0x162   : > { %v377_v42 = vsel %vm376_vm15, %v371_v40, %v373_v29  ;;  %355 = vst [vmem:[#allocation4] sm:$0xf0] %v351_v41  ;;  %v548_v52 = vld [vmem:[#allocation4 + $0x10] sm:$0xff] }
 0x163   : > { %v381_v43 = vsel %vm295_vm11, %v377_v42, 0.0  ;;  %v553_v44 = vld [vmem:[#allocation4 + $0x40] sm:$0xf] }
 0x164   : > { %383 = vst [vmem:[#allocation4 + $0x18] sm:$0xf] %v381_v43  ;;  %1120 = vmatpush.msk.msra.mxu0 %vm1629_vm2, %v553_v44  ;;  %v554_v45 = vld [vmem:[#allocation4 + $0x38] sm:$0xf] }
 0x165   : > { %1122 = vmatpush.msk.msra.mxu1 %vm1629_vm2, %v554_v45  ;;  %vm626_vm2 = vcmask 272520  }
 0x166   : > { %578 = vmatpush.msra.mxu0 %v551_v46  ;;  %627 = vst.msk [vmem:[#allocation3 + $0x8] sm:$0x7] %vm626_vm2, %v1260_v0  ;;  %vm638_vm2 = vcmask 1042568  }
 0x167   : > { %598 = vmatpush.msra.mxu1 %v552_v47 }
 0x168   : > { %579 = vmatpush.msra.mxu0 %v549_v48 }
 0x169   : > { %599 = vmatpush.msra.mxu1 %v550_v49  ;;  %v344_v50 = vpop.permute.xlu1 %343  ;;  %v546_v53 = vld [vmem:[#allocation4] sm:$0xff] }
 0x16a   : > { %v350_v51 = vsel %vm1630_vm1, %v344_v50, %v346_v38 }
 0x16b   : > { %354 = vst [vmem:[#allocation4 + $0x30] sm:$0xf0] %v350_v51  ;;  %600 = vmatpush.msra.mxu1 %v548_v52  ;;  %v547_v54 = vld [vmem:[#allocation4 + $0x18] sm:$0xff] }
 0x16c   : > { %580 = vmatpush.msra.mxu0 %v547_v54 }
 0x16d   : > { %601 = vmatpush.msra.mxu1 %v546_v53 }
 0x16e   : > { %1123 = vmatmul.msk.f32.vlgmr.msra.gmra.mxu1 %vm555_vm3, %v544_v55 }
 0x172   : > { %v545_v57 = vld [vmem:[#allocation4 + $0x30] sm:$0xff] }
 0x173   : > { %581 = vmatpush.msra.mxu0 %v545_v57 }
 0x174   : > { %1121 = vmatmul.msk.f32.vlgmr.msra.gmra.mxu0 %vm555_vm3, %v544_v55  ;;  %vm639_vm3 = vcmask 1046532  }
 0x175   : > { %vm640_vm1 = vmor %vm639_vm3, %vm638_vm2 }
 0x1eb   : > { %v1494_v58 = vpop.f32.mrf.mxu1 }
 0x1ec   : > { %v615_v60 = vadd.f32 %v611_v59, %v1494_v58 }
 0x1ee   : > { %619 = vst.sshfl [vmem:[#allocation1 + $0x8] sm:$0xff pattern:$0x75316420] %v615_v60 }
 0x1f1   : > { %v1497_v61 = vpop.f32.mrf.mxu0 }
 0x1f2   : > { %v614_v63 = vadd.f32 %v610_v62, %v1497_v61 }
 0x1f4   : > { %618 = vst.sshfl [vmem:[#allocation1] sm:$0xff pattern:$0x75316420] %v614_v63 }
 0x1fb   : > { %v621_v2 = vld [vmem:[#allocation1 + $0x1] ss:$2 sm:$0xff] }
 0x1fc   : > { %623 = vst [vmem:[%s255_s23] sm:$0x77] %v621_v2  ;;  %s1216_s23 = scalar_lea.hbm %s1627_s4, 16 }
 0x1fd   : > { %628 = vst.sshfl [vmem:[#allocation1] sm:$0xff pattern:$0x75316420] %v614_v63 }
 0x1fe   : > { %629 = vst.sshfl [vmem:[#allocation1 + $0x8] sm:$0xff pattern:$0x75316420] %v615_v60 }
 0x205   : > { %v631_v0 = vld [vmem:[#allocation1 + $0x1] ss:$2 sm:$0xff] }
 0x206   : > { %632 = vrot.lane.b32.xlu1 %v631_v0, %s1261_s10 }
 0x278   : > { %v633_v3 = vpop.permute.xlu1 %632 }
 0x279   : > { %v634_v4 = vrot.slane %v633_v3, 4 }
 0x27b   : > { %v635_v5 = vsel %vm308_vm4, %v634_v4, %v633_v3  ;;  %642 = vst.msk [vmem:[#allocation3 + $0x8] sm:$0x7] %vm624_vm5, %v634_v4  ;;  %vm1633_vm4 = vcmask 1039360  }
 0x27c   : > { %641 = vst.msk [vmem:[#allocation3] sm:$0x77] %vm640_vm1, %v635_v5  ;;  %vm1635_vm1 = vcmask 1043456  }
 0x282   : > { %v655_v9 = vld [vmem:[#allocation3 + $0x8] sm:$0x7] }
 0x283   : > { %v643_v10 = vld [vmem:[#allocation3] sm:$0x77]  ;;  %660 = vst [vmem:[#allocation1 + $0x10] ss:$2 sm:$0xff] %v655_v9  ;;  %v680_v17 = vld [vmem:[#allocation3 + $0x8] sm:$0x7] }
 0x284   : > { %645 = vst [vmem:[#allocation1] ss:$2 sm:$0xff] %v643_v10  ;;  %v654_v11 = vld [vmem:[#allocation3] sm:$0x77]  ;;  %v712_v19 = vld [vmem:[#allocation3 + $0x8] sm:$0x7] }
 0x285   : > { %v679_v18 = vld [vmem:[#allocation3] sm:$0x77]  ;;  %v742_v24 = vld [vmem:[#allocation3 + $0x8] sm:$0x7] }
 0x286   : > { %v711_v23 = vld [vmem:[#allocation3] sm:$0x77]  ;;  %v765_v29 = vld [vmem:[#allocation3 + $0x8] sm:$0x7] }
 0x287   : > { %v741_v28 = vld [vmem:[#allocation3] sm:$0x77]  ;;  %v797_v34 = vld [vmem:[#allocation3 + $0x8] sm:$0x7] }
 0x288   : > { %v764_v33 = vld [vmem:[#allocation3] sm:$0x77]  ;;  %v827_v39 = vld [vmem:[#allocation3 + $0x8] sm:$0x7] }
 0x289   : > { %v796_v38 = vld [vmem:[#allocation3] sm:$0x77]  ;;  %v852_v44 = vld [vmem:[#allocation3 + $0x8] sm:$0x7] }
 0x28a   : > { %v1507_v14 = vld.sshfl [vmem:[#allocation1 + $0x10] sm:$0xff pattern:$0x75316420] }
 0x28b   : > { %v646_v15 = vld.sshfl [vmem:[#allocation1] sm:$0xff pattern:$0x75316420]  ;;  %v647_v16 = vld.sshfl [vmem:[#allocation1 + $0x8] sm:$0xff pattern:$0x75316420] }
 0x28c   : > { %658 = vst [vmem:[#allocation1] ss:$2 sm:$0xff] %v654_v11  ;;  %v651_v7 = vsel %vm286_vm6, %v647_v16, 0.0  ;;  %v650_v8 = vsel %vm285_vm7, %v646_v15, 0.0  ;;  %v826_v43 = vld [vmem:[#allocation3] sm:$0x77] }
 0x28d   : > { %685 = vst [vmem:[#allocation1 + $0x10] ss:$2 sm:$0xff] %v680_v17  ;;  %v851_v48 = vld [vmem:[#allocation3] sm:$0x77]  ;;  %v666_v59 = vrot.slane %v1507_v14, 5 }
 0x28e   : > { %653 = vst [vmem:[#allocation5 + $0x10] sm:$0x7] %v651_v7 }
 0x28f   : > { %652 = vst [vmem:[#allocation5 + $0x8] sm:$0x7] %v650_v8 }
 0x293   : > { %v1513_v20 = vld.sshfl [vmem:[#allocation1] sm:$0xff pattern:$0x75316420]  ;;  %v1515_v21 = vld.sshfl [vmem:[#allocation1 + $0x8] sm:$0xff pattern:$0x75316420] }
 0x294   : > { %683 = vst [vmem:[#allocation1] ss:$2 sm:$0xff] %v679_v18  ;;  %v688_v22 = vld.sshfl [vmem:[#allocation1 + $0x10] sm:$0xff pattern:$0x75316420]  ;;  %v665_v60 = vrot.slane %v1515_v21, 5 }
 0x295   : > { %693 = vrot.lane.b32.xlu0 %v688_v22, %s1268_s26  ;;  %717 = vst [vmem:[#allocation1 + $0x10] ss:$2 sm:$0xff] %v712_v19 }
 0x29b   : > { %v687_v25 = vld.sshfl [vmem:[#allocation1 + $0x8] sm:$0xff pattern:$0x75316420]  ;;  %v686_v26 = vld.sshfl [vmem:[#allocation1] sm:$0xff pattern:$0x75316420] }
 0x29c   : > { %v720_v27 = vld.sshfl [vmem:[#allocation1 + $0x10] sm:$0xff pattern:$0x75316420]  ;;  %715 = vst [vmem:[#allocation1] ss:$2 sm:$0xff] %v711_v23 }
 0x29d   : > { %725 = vrot.lane.b32.xlu2 %v720_v27, %s1262_s11  ;;  %748 = vst [vmem:[#allocation1 + $0x11] ss:$2 sm:$0xff] %v742_v24 }
 0x2a3   : > { %v718_v30 = vld.sshfl [vmem:[#allocation1] sm:$0xff pattern:$0x75316420]  ;;  %v719_v31 = vld.sshfl [vmem:[#allocation1 + $0x8] sm:$0xff pattern:$0x75316420] }
 0x2a4   : > { %746 = vst [vmem:[#allocation1 + $0x1] ss:$2 sm:$0xff] %v741_v28  ;;  %723 = vrot.lane.b32.xlu1 %v719_v31, %s1262_s11  ;;  %721 = vrot.lane.b32.xlu0 %v718_v30, %s1262_s11  ;;  %v751_v32 = vld.sshfl [vmem:[#allocation1 + $0x10] sm:$0xff pattern:$0x75316420]  ;;  %s231_s11 = sand.u32 1, %s1250_s19  }
 0x2a5   : > { %691 = vrot.lane.b32.xlu2 %v687_v25, %s1268_s26  ;;  %770 = vst [vmem:[#allocation1 + $0x10] ss:$2 sm:$0xff] %v765_v29 }
 0x2ab   : > { %v749_v35 = vld.sshfl [vmem:[#allocation1] sm:$0xff pattern:$0x75316420]  ;;  %v750_v36 = vld.sshfl [vmem:[#allocation1 + $0x8] sm:$0xff pattern:$0x75316420] }
 0x2ac   : > { %v773_v37 = vld.sshfl [vmem:[#allocation1 + $0x10] sm:$0xff pattern:$0x75316420]  ;;  %754 = vrot.lane.b32.xlu1 %v750_v36, %s1263_s12  ;;  %768 = vst [vmem:[#allocation1] ss:$2 sm:$0xff] %v764_v33 }
 0x2ad   : > { %689 = vrot.lane.b32.xlu2 %v686_v26, %s1268_s26  ;;  %778 = vrot.lane.b32.xlu0 %v773_v37, %s1264_s13  ;;  %802 = vst [vmem:[#allocation1 + $0x10] ss:$2 sm:$0xff] %v797_v34 }
 0x2b3   : > { %v771_v40 = vld.sshfl [vmem:[#allocation1] sm:$0xff pattern:$0x75316420]  ;;  %v772_v41 = vld.sshfl [vmem:[#allocation1 + $0x8] sm:$0xff pattern:$0x75316420] }
 0x2b4   : > { %800 = vst [vmem:[#allocation1] ss:$2 sm:$0xff] %v796_v38  ;;  %v805_v42 = vld.sshfl [vmem:[#allocation1 + $0x10] sm:$0xff pattern:$0x75316420] }
 0x2b5   : > { %756 = vrot.lane.b32.xlu2 %v751_v32, %s1263_s12  ;;  %774 = vrot.lane.b32.xlu0 %v771_v40, %s1264_s13  ;;  %832 = vst [vmem:[#allocation1 + $0x10] ss:$2 sm:$0xff] %v827_v39 }
 0x2bb   : > { %v804_v45 = vld.sshfl [vmem:[#allocation1 + $0x8] sm:$0xff pattern:$0x75316420]  ;;  %v803_v46 = vld.sshfl [vmem:[#allocation1] sm:$0xff pattern:$0x75316420] }
 0x2bc   : > { %808 = vrot.lane.b32.xlu1 %v804_v45, %s1265_s14  ;;  %830 = vst [vmem:[#allocation1] ss:$2 sm:$0xff] %v826_v43  ;;  %v835_v47 = vld.sshfl [vmem:[#allocation1 + $0x10] sm:$0xff pattern:$0x75316420] }
 0x2bd   : > { %810 = vrot.lane.b32.xlu2 %v805_v42, %s1265_s14  ;;  %857 = vst [vmem:[#allocation1 + $0x10] ss:$2 sm:$0xff] %v852_v44  ;;  %v838_v52 = vrot.slane %v835_v47, 3 }
 0x2c3   : > { %v833_v49 = vld.sshfl [vmem:[#allocation1] sm:$0xff pattern:$0x75316420]  ;;  %v834_v50 = vld.sshfl [vmem:[#allocation1 + $0x8] sm:$0xff pattern:$0x75316420] }
 0x2c4   : > { %806 = vrot.lane.b32.xlu1 %v803_v46, %s1265_s14  ;;  %v837_v51 = vrot.slane %v834_v50, 3  ;;  %855 = vst [vmem:[#allocation1] ss:$2 sm:$0xff] %v851_v48  ;;  %v836_v55 = vrot.slane %v833_v49, 3 }
 0x2c5   : > { %776 = vrot.lane.b32.xlu2 %v772_v41, %s1264_s13  ;;  %v860_v57 = vld.sshfl [vmem:[#allocation1 + $0x10] sm:$0xff pattern:$0x75316420]  ;;  %s1138_s13 = sshll.u32 %s1321_s22, 3 }
 0x2c6   : > { %841 = vrot.lane.b32.xlu0 %v837_v51, %s1266_s15 }
 0x2cb   : > { %v858_v53 = vld.sshfl [vmem:[#allocation1] sm:$0xff pattern:$0x75316420]  ;;  %v859_v54 = vld.sshfl [vmem:[#allocation1 + $0x8] sm:$0xff pattern:$0x75316420] }
 0x2cc   : > { %843 = vrot.lane.b32.xlu1 %v838_v52, %s1266_s15  ;;  %975 = vst [vmem:[#allocation1] ss:$2 sm:$0xff] %v1359_v1  ;;  %v664_v1 = vrot.slane %v1513_v20, 5 }
 0x2cd   : > { %861 = vrot.lane.b32.xlu2 %v858_v53, %s1267_s16 }
 0x2ce   : > { %839 = vrot.lane.b32.xlu0 %v836_v55, %s1266_s15 }
 0x2d4   : > { %865 = vrot.lane.b32.xlu1 %v860_v57, %s1267_s16 }
 0x2d5   : > { %671 = vrot.lane.b32.xlu2 %v666_v59, %s1269_s30 }
 0x2d6   : > { %863 = vrot.lane.b32.xlu0 %v859_v54, %s1267_s16  ;;  %s1005_s16 = scalar_lea.hbm %s1627_s4, %s1138_s13 }
 0x2d7   : > { %s1009_s22 = sshll.u32 %s1005_s16, 4  ;;  %s1010_s22 = int_to_ptr.hbm [resolvable:$true] %s1009_s22 }
 0x2d8   : > { %s1210_s7 = sshra.s32 %s1010_s22, 4  ;;  %s1211_s7 = int_to_ptr.hbm [resolvable:$true] %s1210_s7 }
 0x2d9   : > { %s1212_s8 = scalar_lea.hbm %s1211_s7, 8  ;;  %p1217_p0 = scmp.lt.s32.totalorder %s1211_s7, %s1627_s4 }
 0x2da   : > { %p1213_p11 = scmp.ne.s32.totalorder %s1211_s7, %s1212_s8  ;;  %p1218_p1 = scmp.lt.s32.totalorder %s1216_s23, %s1212_s8 }
 0x2dc   : > { %669 = vrot.lane.b32.xlu1 %v665_v60, %s1269_s30  ;;  %p1214_p12 = pnand %p1213_p11, %p1338_p5  ;;  %p1219_p2 = por %p1218_p1, %p1217_p0 }
 0x2de   : > { %752 = vrot.lane.b32.xlu0 %v749_v35, %s1263_s12  ;;  %s1113_s12 = sshll.u32 %s231_s11, 3  ;;  %p1215_p13 = pneg %p1214_p12 }
 0x2df   : > { %s233_s25 = scalar_lea.vmem [#allocation6], %s1113_s12 }
 0x2e0   : > { %s1007_s26 = sshll.u32 %s233_s25, 4  ;;  %p1220_p3 = pnand %p1219_p2, %p1215_p13  ;;  %s1008_s26 = int_to_ptr.vmem [resolvable:$true] %s1007_s26 }
 0x2e4   : > { %667 = vrot.lane.b32.xlu1 %v664_v1, %s1269_s30  ;;  %s989_s30 = scalar_lea.sflag [#allocation7], %s231_s11 }
 0x2f7   : > { %v726_v62 = vpop.permute.xlu2 %725 }
 0x2ff   : > { %v692_v63 = vpop.permute.xlu2 %691 }
 0x307   : > { %v694_v2 = vpop.permute.xlu0 %693  ;;  %v690_v0 = vpop.permute.xlu2 %689 }
 0x308   : > { %v696_v3 = vsel %vm376_vm15, %v692_v63, %v694_v2  ;;  %v695_v4 = vsel %vm376_vm15, %v690_v0, %v692_v63  ;;  %v875_v2 = vld [vmem:[%s1626_s3] sm:$0xf] }
 0x309   : > { %v700_v5 = vsel %vm296_vm12, %v696_v3, 0.0  ;;  %v699_v9 = vsel %vm295_vm11, %v695_v4, 0.0 }
 0x30a   : > { %v704_v10 = vrot.slane %v700_v5, 2  ;;  %v703_v11 = vrot.slane %v699_v9, 2 }
 0x30c   : > { %708 = vst [vmem:[#allocation5 + $0x10] sm:$0xc0] %v704_v10 }
 0x30d   : > { %710 = vst [vmem:[#allocation5 + $0x18] sm:$0x1] %v704_v10 }
 0x30e   : > { %707 = vst [vmem:[#allocation5 + $0x8] sm:$0xc0] %v703_v11 }
 0x30f   : > { %709 = vst [vmem:[#allocation5] sm:$0x1] %v703_v11  ;;  %v757_v14 = vpop.permute.xlu2 %756 }
 0x316   : > { %v724_v15 = vpop.permute.xlu1 %723  ;;  %v722_v16 = vpop.permute.xlu0 %721 }
 0x317   : > { %v811_v17 = vpop.permute.xlu2 %810  ;;  %v728_v7 = vsel %vm401_vm8, %v724_v15, %v726_v62  ;;  %v727_v8 = vsel %vm401_vm8, %v722_v16, %v724_v15  ;;  %vm884_vm8 = vcmask 220160  }
 0x318   : > { %v732_v18 = vsel %vm286_vm6, %v728_v7, 0.0  ;;  %v731_v19 = vsel %vm285_vm7, %v727_v8, 0.0 }
 0x319   : > { %v736_v20 = vrot.slane %v732_v18, 7  ;;  %v735_v21 = vrot.slane %v731_v19, 7 }
 0x31b   : > { %740 = vst [vmem:[#allocation5 + $0x18] sm:$0xe] %v736_v20 }
 0x31c   : > { %739 = vst [vmem:[#allocation5] sm:$0xe] %v735_v21 }
 0x31e   : > { %v755_v22 = vpop.permute.xlu1 %754 }
 0x31f   : > { %v777_v23 = vpop.permute.xlu2 %776  ;;  %v779_v24 = vpop.permute.xlu0 %778  ;;  %v759_v25 = vsel %vm432_vm10, %v755_v22, %v757_v14 }
 0x320   : > { %v781_v26 = vsel %vm455_vm9, %v777_v23, %v779_v24  ;;  %763 = vst [vmem:[#allocation5 + $0x18] sm:$0x70] %v759_v25 }
 0x321   : > { %v785_v27 = vsel %vm296_vm12, %v781_v26, 0.0 }
 0x322   : > { %v789_v28 = vrot.slane %v785_v27, 1 }
 0x324   : > { %793 = vst [vmem:[#allocation5 + $0x18] sm:$0x80] %v789_v28 }
 0x325   : > { %795 = vst [vmem:[#allocation5 + $0x30] sm:$0x3] %v789_v28 }
 0x327   : > { %v775_v29 = vpop.permute.xlu0 %774  ;;  %v862_v12 = vpop.permute.xlu2 %861 }
 0x328   : > { %v780_v30 = vsel %vm455_vm9, %v775_v29, %v777_v23 }
 0x329   : > { %v784_v31 = vsel %vm295_vm11, %v780_v30, 0.0 }
 0x32a   : > { %v788_v32 = vrot.slane %v784_v31, 1 }
 0x32b   : > { %v879_v62 = vld [vmem:[#allocation5 + $0x18] sm:$0xff] }
 0x32c   : > { %792 = vst [vmem:[#allocation5] sm:$0x80] %v788_v32 }
 0x32d   : > { %794 = vst [vmem:[#allocation5 + $0x28] sm:$0x3] %v788_v32 }
 0x32e   : > { %v809_v33 = vpop.permute.xlu1 %808 }
 0x32f   : > { %v813_v34 = vsel %vm486_vm13, %v809_v33, %v811_v17  ;;  %v672_v51 = vpop.permute.xlu2 %671 }
 0x330   : > { %v817_v35 = vsel %vm286_vm6, %v813_v34, 0.0  ;;  %vm888_vm6 = vcmask 1042432   ;;  %v977_v34 = vld.sshfl [vmem:[#allocation1 + $0x8] sm:$0xff pattern:$0x75316420] }
 0x331   : > { %v821_v36 = vrot.slane %v817_v35, 6 }
 0x333   : > { %825 = vst [vmem:[#allocation5 + $0x30] sm:$0x1c] %v821_v36 }
 0x336   : > { %v807_v37 = vpop.permute.xlu1 %806 }
 0x337   : > { %v812_v38 = vsel %vm486_vm13, %v807_v37, %v809_v33 }
 0x338   : > { %v816_v39 = vsel %vm285_vm7, %v812_v38, 0.0  ;;  %v842_v40 = vpop.permute.xlu0 %841  ;;  %vm1634_vm7 = vmmov %vm1633_vm4 }
 0x339   : > { %v820_v41 = vrot.slane %v816_v39, 6 }
 0x33b   : > { %824 = vst [vmem:[#allocation5 + $0x28] sm:$0x1c] %v820_v41 }
 0x33e   : > { %v844_v42 = vpop.permute.xlu1 %843 }
 0x33f   : > { %v846_v43 = vsel %vm512_vm14, %v842_v40, %v844_v42 }
 0x340   : > { %850 = vst [vmem:[#allocation5 + $0x30] sm:$0xe0] %v846_v43  ;;  %v840_v44 = vpop.permute.xlu0 %839 }
 0x341   : > { %v845_v45 = vsel %vm512_vm14, %v840_v44, %v842_v40 }
 0x342   : > { %849 = vst [vmem:[#allocation5 + $0x28] sm:$0xe0] %v845_v45 }
 0x346   : > { %v866_v46 = vpop.permute.xlu1 %865 }
 0x347   : > { %v881_v6 = vld [vmem:[#allocation5 + $0x30] sm:$0xff] }
 0x348   : > { %v864_v47 = vpop.permute.xlu0 %863 }
 0x349   : > { %v867_v48 = vsel %vm535_vm0, %v862_v12, %v864_v47  ;;  %v868_v49 = vsel %vm535_vm0, %v864_v47, %v866_v46  ;;  %v880_v56 = vld [vmem:[#allocation5 + $0x28] sm:$0xff] }
 0x34a   : > { %v871_v13 = vsel %vm295_vm11, %v867_v48, 0.0  ;;  %v872_v50 = vsel %vm296_vm12, %v868_v49, 0.0 }
 0x34b   : > { %873 = vst [vmem:[#allocation5 + $0x20] sm:$0x7] %v871_v13 }
 0x34c   : > { %874 = vst [vmem:[#allocation5 + $0x38] sm:$0x7] %v872_v50 }
 0x34e   : > { %v670_v52 = vpop.permute.xlu1 %669 }
 0x34f   : > { %v674_v53 = vsel %vm1633_vm4, %v670_v52, %v672_v51 }
 0x350   : > { %678 = vst [vmem:[#allocation5 + $0x10] sm:$0x38] %v674_v53  ;;  %v753_v54 = vpop.permute.xlu0 %752 }
 0x351   : > { %v758_v55 = vsel %vm432_vm10, %v753_v54, %v755_v22 }
 0x352   : > { %762 = vst [vmem:[#allocation5] sm:$0x70] %v758_v55  ;;  %v882_v57 = vld [vmem:[#allocation5 + $0x20] sm:$0x7] }
 0x353   : > { %1124 = vmatpush.msk.msra.mxu2 %vm888_vm6, %v882_v57  ;;  %v883_v59 = vld [vmem:[#allocation5 + $0x38] sm:$0x7] }
 0x354   : > { %1126 = vmatpush.msk.msra.mxu3 %vm888_vm6, %v883_v59 }
 0x355   : > { %908 = vmatpush.msra.mxu2 %v880_v56 }
 0x356   : > { %928 = vmatpush.msra.mxu3 %v881_v6  ;;  %v668_v60 = vpop.permute.xlu1 %667 }
 0x357   : > { %v673_v1 = vsel %vm1634_vm7, %v668_v60, %v670_v52  ;;  %v877_v63 = vld [vmem:[#allocation5 + $0x10] sm:$0xff] }
 0x358   : > { %677 = vst [vmem:[#allocation5 + $0x8] sm:$0x38] %v673_v1  ;;  %929 = vmatpush.msra.mxu3 %v879_v62 }
 0x359   : > { %v878_v0 = vld [vmem:[#allocation5] sm:$0xff] }
 0x35a   : > { %930 = vmatpush.msra.mxu3 %v877_v63  ;;  %909 = vmatpush.msra.mxu2 %v878_v0 }
 0x35b   : > { %1127 = vmatmul.msk.f32.vlgmr.msra.gmra.mxu3 %vm884_vm8, %v875_v2 }
 0x35f   : > { %v876_v3 = vld [vmem:[#allocation5 + $0x8] sm:$0xff] }
 0x360   : > { %910 = vmatpush.msra.mxu2 %v876_v3 }
 0x361   : > { %1125 = vmatmul.msk.f32.vlgmr.msra.gmra.mxu2 %vm884_vm8, %v875_v2 }
 0x3de   : > { %v932_v4 = vpop.f32.mrf.mxu3 }
 0x3df   : > { %v1129_v5 = vmul.f32 -1.442695, %v932_v4 }
 0x3e1   : > { %1188 = vpow2.f32 %v1129_v5 }
 0x3e4   : > { %v912_v9 = vpop.f32.mrf.mxu2 }
 0x3e5   : > { %v1128_v10 = vmul.f32 -1.442695, %v912_v9 }
 0x3e7   : > { %v1189_v11 = vpop.eup %1188  ;;  %1190 = vpow2.f32 %v1128_v10 }
 0x3e8   : > { %v942_v14 = vadd.f32 1.0, %v1189_v11 }
 0x3ea   : > { %1192 = vrcp.f32 %v942_v14  ;;  %v969_v18 = vand.u32 2147483648, %v942_v14  ;;  %v967_v20 = vand.u32 2147483647, %v942_v14  ;;  %vm963_vm10 = vweird.f32 %v942_v14 }
 0x3ec   : > { %v970_v24 = vor.u32 1.1754944e-38, %v969_v18  ;;  %vm968_vm12 = vcmp.eq.f32.partialorder %v967_v20, 8.507059e+37 }
 0x3ed   : > { %v1191_v15 = vpop.eup %1190 }
 0x3ee   : > { %v941_v16 = vadd.f32 1.0, %v1191_v15 }
 0x3f0   : > { %v1193_v17 = vpop.eup %1192  ;;  %1194 = vrcp.f32 %v941_v16  ;;  %v954_v27 = vand.u32 2147483648, %v941_v16  ;;  %v952_v30 = vand.u32 2147483647, %v941_v16  ;;  %vm948_vm14 = vweird.f32 %v941_v16 }
 0x3f1   : > { %v959_v7 = vmul.f32 %v1193_v17, %v942_v14  ;;  %vm964_vm9 = vweird.f32 %v1193_v17 }
 0x3f2   : > { %vm965_vm11 = vmor %vm963_vm10, %vm964_vm9  ;;  %v955_v33 = vor.u32 1.1754944e-38, %v954_v27  ;;  %vm953_vm0 = vcmp.eq.f32.partialorder %v952_v30, 8.507059e+37 }
 0x3f3   : > { %v960_v8 = vsub.f32 1.0, %v959_v7 }
 0x3f5   : > { %v961_v19 = vmul.f32 %v1193_v17, %v960_v8 }
 0x3f6   : > { %v1195_v21 = vpop.eup %1194 }
 0x3f7   : > { %v962_v22 = vadd.f32 %v1193_v17, %v961_v19  ;;  %v944_v23 = vmul.f32 %v1195_v21, %v941_v16  ;;  %vm949_vm13 = vweird.f32 %v1195_v21 }
 0x3f8   : > { %vm950_vm15 = vmor %vm948_vm14, %vm949_vm13 }
 0x3f9   : > { %v945_v25 = vsub.f32 1.0, %v944_v23  ;;  %v966_v26 = vsel %vm965_vm11, %v1193_v17, %v962_v22 }
 0x3fa   : > { %v971_v28 = vsel %vm968_vm12, %v970_v24, %v966_v26 }
 0x3fb   : > { %v946_v29 = vmul.f32 %v1195_v21, %v945_v25  ;;  %v974_v31 = vmul.f32 %v971_v28, %v1494_v58  ;;  %v976_v58 = vld.sshfl [vmem:[#allocation1] sm:$0xff pattern:$0x75316420] }
 0x3fd   : > { %v947_v32 = vadd.f32 %v1195_v21, %v946_v29  ;;  %v981_v36 = vadd.f32 %v977_v34, %v974_v31 }
 0x3ff   : > { %v951_v35 = vsel %vm950_vm15, %v1195_v21, %v947_v32  ;;  %v984_v40 = vrot.slane %v981_v36, 4 }
 0x400   : > { %v956_v37 = vsel %vm953_vm0, %v955_v33, %v951_v35 }
 0x401   : > { %v973_v38 = vmul.f32 %v956_v37, %v1497_v61 }
 0x403   : > { %v980_v39 = vadd.f32 %v976_v58, %v973_v38 }
 0x405   : > { %v985_v41 = vsel %vm1635_vm1, %v980_v39, %v984_v40 }
 0x406   : > { %987 = vst [vmem:[%s233_s25] sm:$0xff] %v985_v41 }
 0x407   : > { %1223 = shalt.err (!%p1220_p3)
}
 0x408   : > { %1139 = dma.vmem_to_hbm [thread:$0]  (%p1338_p5), %s1008_s26, 128, %s1010_s22, %s989_s30  }
 0x409 PF: > { %p1145_p4 = scmp.ge.s32.totalorder %s1258_s21, 2  ;;  %s1024_s11 = sand.u32 1, %s1246_s18  }
 0x40a   : > { %s1025_s12 = scalar_lea.sflag [#allocation7], %s1024_s11 }
 0x40b   : > { %p1142_p7 = pnand %p1145_p4, %p1342_p6 }
 0x40d   : > { %p1143_p8 = pneg %p1142_p7 }
 0x40f   : > { %1241 = dma.done.wait (%p1143_p8), %s1025_s12, 128  }
 0x410   : > { %1243 = vsyncadd (%p1143_p8), %s1025_s12, 4294967168  ;;  %p16_p9 = scmp.ge.s32.totalorder %s1325_s24, 4   ;;  %s1636_s18 = smov %s1250_s19 }
 0x411   : > { %s1637_s19 = smov %s1254_s20  ;;  %s1638_s20 = smov %s1336_s27 }
 0x412   : > { %s1639_s21 = smov %s1325_s24  ;;  %18 = sbr.rel (!%p16_p9) target bundleno = 3 (0x3), region = 108 }
 0x417   :  { %1039 = vsyncpa [#allocation7], 1 }
 0x418   :  { %1041 = vsyncpa [#allocation7 + $0x1], 1 }

</bundles_post_ra>
